<compile_context>
chip_gen: v7x
topology: tpu7x:2x2x1
jax: 0.10.0
libtpu: 0.0.40
codegen_flags: <defaults>
</compile_context>

<pallas_src>
import numpy as np
import jax
import jax.numpy as jnp
from jax import lax
from jax.experimental import pallas as pl
from jax.experimental.pallas import tpu as pltpu


# Contract the last dim of both operands: w (out, in) x x (TB, in) -> (out, TB).
_NT_DIMS = (((1,), (1,)), ((), ()))


def mlp_kernel(x_ref,
               w1_ref, b1_ref,
               w2_ref, b2_ref,
               w3_ref, b3_ref,
               w4_ref, b4_ref,
               o_ref):
    """Fused 4x (Linear + sigmoid) on a (TB, N) native-layout batch tile.

    Weights/biases are pre-folded so each layer is a single tanh; only the final
    layer keeps its 0.5*t + 0.5 output affine (== sigmoid).
    """
    # Layer 1: NT matmul against the native (TB, N) tile -> activations are
    # batch-on-lanes (out, TB); no wrapper-side or explicit x transpose needed.
    z1 = lax.dot_general(w1_ref[...], x_ref[...], _NT_DIMS,
                         preferred_element_type=jnp.float32)
    t1 = jnp.tanh(z1 + b1_ref[...])                                      # (N,  TB)
    t2 = jnp.tanh(jnp.dot(w2_ref[...], t1,
                          preferred_element_type=jnp.float32) + b2_ref[...])  # (2N, TB)
    t3 = jnp.tanh(jnp.dot(w3_ref[...], t2,
                          preferred_element_type=jnp.float32) + b3_ref[...])  # (N,  TB)
    t4 = jnp.tanh(jnp.dot(w4_ref[...], t3,
                          preferred_element_type=jnp.float32) + b4_ref[...])  # (1,  TB)

    # Final sigmoid epilogue (the only one not folded into downstream weights).
    o_ref[...] = (0.5 * t4 + 0.5).astype(o_ref.dtype)


def _pick_batch_tile(B, max_tile=8192):
    """Largest lane-aligned divisor of B <= max_tile, keeping >= 4 grid steps."""
    if B <= 512 or B % 128 != 0:
        return B                      # single tile; block == full array is legal
    target = min(max_tile, max(128, B // 4))   # >= 4 steps feeds both v7x cores
    target -= target % 128
    d = target
    while d >= 128:
        if B % d == 0:
            return d
        d -= 128
    return B


def mlp_forward(x, folded_params, *, tb=None):
    """x: (B, N) f32 in native layout; folded_params from fold_sigmoid_into_params.

    Returns (B, 1) f32, matching MLP.forward.
    """
    B, N = x.shape
    if tb is None:
        tb = _pick_batch_tile(B)
    assert B % tb == 0, "batch must be divisible by the batch tile"
    assert tb == B or tb % 128 == 0, "batch tile must be lane-aligned (mult of 128)"

    def pinned(shape):
        # Same block index at every grid step: stays resident in VMEM, no re-DMA.
        return pl.BlockSpec(shape, lambda i: (0, 0))

    in_specs = [
        pl.BlockSpec((tb, N), lambda i: (i, 0)),          # native-layout x tile
        pinned(folded_params["w1"].shape), pinned(folded_params["b1"].shape),
        pinned(folded_params["w2"].shape), pinned(folded_params["b2"].shape),
        pinned(folded_params["w3"].shape), pinned(folded_params["b3"].shape),
        pinned(folded_params["w4"].shape), pinned(folded_params["b4"].shape),
    ]
    out_specs = pl.BlockSpec((1, tb), lambda i: (0, i))   # lane-dense output row

    n_out = int(folded_params["w4"].shape[0])             # == 1
    param_bytes = sum(int(v.size) * 4 for v in folded_params.values())
    cost = pl.CostEstimate(
        flops=2 * B * sum(int(folded_params[f"w{l}"].size) for l in range(1, 5)),
        transcendentals=B * sum(int(folded_params[f"b{l}"].shape[0])
                                for l in range(1, 5)),
        bytes_accessed=B * (N + n_out) * 4 + param_bytes,
    )

    out_row = pl.pallas_call(
        mlp_kernel,
        out_shape=jax.ShapeDtypeStruct((1, B), jnp.float32),
        grid_spec=pltpu.PrefetchScalarGridSpec(
            num_scalar_prefetch=0,
            grid=(B // tb,),
            in_specs=in_specs,
            out_specs=out_specs,
        ),
        compiler_params=pltpu.CompilerParams(
            dimension_semantics=("parallel",),
            # Above v5e's 16 MiB scoped-VMEM default so large batch tiles fit;
            # <= the 32 MiB default on v6e/v7x.  (~200 B VMEM per tile element.)
            vmem_limit_bytes=32 * 1024 * 1024,
        ),
        cost_estimate=cost,
    )(x,
      folded_params["w1"], folded_params["b1"],
      folded_params["w2"], folded_params["b2"],
      folded_params["w3"], folded_params["b3"],
      folded_params["w4"], folded_params["b4"])

    # (1, B) -> (B, 1) is a pure reshape of contiguous data (no transpose copy).
    return out_row.reshape(B, 1)


def init_params(key, n_feat):
    """nn.Linear-style init.  Weights (out, in); biases (out, 1) for lane broadcast."""
    dims = [(n_feat, n_feat),        # fc1: N  -> N
            (n_feat, 2 * n_feat),    # fc2: N  -> 2N
            (2 * n_feat, n_feat),    # fc3: 2N -> N
            (n_feat, 1)]             # fc4: N  -> 1
    params = {}
    for i, (fan_in, fan_out) in enumerate(dims, start=1):
        key, kw, kb = jax.random.split(key, 3)
        bound = 1.0 / jnp.sqrt(jnp.float32(fan_in))
        params[f"w{i}"] = jax.random.uniform(
            kw, (fan_out, fan_in), jnp.float32, -bound, bound)
        params[f"b{i}"] = jax.random.uniform(
            kb, (fan_out, 1), jnp.float32, -bound, bound)
    return params


def fold_sigmoid_into_params(params):
    """Host-side (float64) fold of sigmoid(z) = 0.5*tanh(0.5*z) + 0.5 into weights.

    After folding:  t_1 = tanh(W1' x + b1'),  t_l = tanh(Wl' t_{l-1} + bl') for
    l = 2..4,  and the network output is 0.5*t_4 + 0.5.
    """
    folded = {}
    for l in range(1, 5):
        w = np.asarray(params[f"w{l}"], dtype=np.float64)
        b = np.asarray(params[f"b{l}"], dtype=np.float64)
        if l == 1:
            wf = 0.5 * w                                   # absorb inner 0.5
            bf = 0.5 * b
        else:
            # absorb previous layer's (0.5*t + 0.5) and this layer's inner 0.5
            wf = 0.25 * w
            bf = 0.5 * b + 0.25 * w.sum(axis=1, keepdims=True)
        folded[f"w{l}"] = jnp.asarray(wf, dtype=jnp.float32)
        folded[f"b{l}"] = jnp.asarray(bf, dtype=jnp.float32)
    return folded


def reference_forward(x, params):
    """Pure-JAX mirror of the PyTorch module (unfolded params)."""
    h = x
    for i in range(1, 5):
        w = params[f"w{i}"]          # (out, in)
        b = params[f"b{i}"]          # (out, 1)
        h = jax.nn.sigmoid(h @ w.T + b[:, 0])
    return h                          # (B, 1)


if __name__ == "__main__":
    N_FEAT = 8      # len(INPUTS + FEATURES) in the Titanic script
    BATCH = 512     # small demo batch; tb=128 below exercises a 4-step pipelined grid
    # NOTE: at production sizes (B in the 100K+ range) the auto-picked 8K tile and
    # the removed transposes are what matter; this demo only validates correctness.

    key = jax.random.PRNGKey(0)
    key, kx = jax.random.split(key)
    x = jax.random.normal(kx, (BATCH, N_FEAT), jnp.float32)

    params = init_params(key, N_FEAT)
    folded = fold_sigmoid_into_params(params)

    out = mlp_forward(x, folded, tb=128)
    out = jax.block_until_ready(out)

    ref = reference_forward(x, params)
    assert out.shape == (BATCH, 1)
    assert jnp.allclose(out, ref, atol=1e-4, rtol=1e-4), "mismatch vs JAX reference"

    print("KERNEL_OK")
</pallas_src>

<mosaic_0001>
module attributes {stable_mosaic.version = 11 : i64} {
  func.func @mlp_kernel(%arg0: i32, %arg1: memref<128x8xf32, #tpu.memory_space<vmem>>, %arg2: memref<8x8xf32, #tpu.memory_space<vmem>>, %arg3: memref<8x1xf32, #tpu.memory_space<vmem>>, %arg4: memref<16x8xf32, #tpu.memory_space<vmem>>, %arg5: memref<16x1xf32, #tpu.memory_space<vmem>>, %arg6: memref<8x16xf32, #tpu.memory_space<vmem>>, %arg7: memref<8x1xf32, #tpu.memory_space<vmem>>, %arg8: memref<1x8xf32, #tpu.memory_space<vmem>>, %arg9: memref<1x1xf32, #tpu.memory_space<vmem>>, %arg10: memref<1x128xf32, #tpu.memory_space<vmem>>) attributes {dimension_semantics = [#tpu.dimension_semantics<parallel>], iteration_bounds = array<i64: 4>, scalar_prefetch = 0 : i64, scratch_operands = 0 : i64, tpu.core_type = #tpu.core_type<tc>, window_params = [{transform_indices = @transform_0, window_bounds = array<i64: 128, 8>}, {pipeline_mode = #tpu.pipeline_mode<synchronous>, transform_indices = @transform_1, window_bounds = array<i64: 8, 8>}, {pipeline_mode = #tpu.pipeline_mode<synchronous>, transform_indices = @transform_2, window_bounds = array<i64: 8, 1>}, {pipeline_mode = #tpu.pipeline_mode<synchronous>, transform_indices = @transform_3, window_bounds = array<i64: 16, 8>}, {pipeline_mode = #tpu.pipeline_mode<synchronous>, transform_indices = @transform_4, window_bounds = array<i64: 16, 1>}, {pipeline_mode = #tpu.pipeline_mode<synchronous>, transform_indices = @transform_5, window_bounds = array<i64: 8, 16>}, {pipeline_mode = #tpu.pipeline_mode<synchronous>, transform_indices = @transform_6, window_bounds = array<i64: 8, 1>}, {pipeline_mode = #tpu.pipeline_mode<synchronous>, transform_indices = @transform_7, window_bounds = array<i64: 1, 8>}, {pipeline_mode = #tpu.pipeline_mode<synchronous>, transform_indices = @transform_8, window_bounds = array<i64: 1, 1>}, {transform_indices = @transform_9, window_bounds = array<i64: 1, 128>}]} {
    %c0 = arith.constant 0 : index
    %c0_0 = arith.constant 0 : index
    %0 = vector.load %arg2[%c0, %c0_0] : memref<8x8xf32, #tpu.memory_space<vmem>>, vector<8x8xf32>
    %c0_1 = arith.constant 0 : index
    %c0_2 = arith.constant 0 : index
    %1 = vector.load %arg1[%c0_1, %c0_2] : memref<128x8xf32, #tpu.memory_space<vmem>>, vector<128x8xf32>
    %cst = arith.constant dense<0.000000e+00> : vector<8x128xf32>
    %2 = tpu.matmul %0, %1, %cst {dimension_numbers = #tpu.dot_dimension_numbers<[1], [1], [0], [0], [0, 0, 1, 0], [], []>} : vector<8x8xf32>, vector<128x8xf32>, vector<8x128xf32> -> vector<8x128xf32>
    %c0_3 = arith.constant 0 : index
    %c0_4 = arith.constant 0 : index
    %3 = vector.load %arg3[%c0_3, %c0_4] : memref<8x1xf32, #tpu.memory_space<vmem>>, vector<8x1xf32>
    %4 = vector.broadcast %3 : vector<8x1xf32> to vector<8x128xf32>
    %5 = arith.addf %2, %4 : vector<8x128xf32>
    %6 = math.tanh %5 : vector<8x128xf32>
    %c0_5 = arith.constant 0 : index
    %c0_6 = arith.constant 0 : index
    %7 = vector.load %arg4[%c0_5, %c0_6] : memref<16x8xf32, #tpu.memory_space<vmem>>, vector<16x8xf32>
    %cst_7 = arith.constant dense<0.000000e+00> : vector<16x128xf32>
    %8 = tpu.matmul %7, %6, %cst_7 {dimension_numbers = #tpu.dot_dimension_numbers<[1], [0], [0], [1], [0, 0, 1, 1], [], []>} : vector<16x8xf32>, vector<8x128xf32>, vector<16x128xf32> -> vector<16x128xf32>
    %c0_8 = arith.constant 0 : index
    %c0_9 = arith.constant 0 : index
    %9 = vector.load %arg5[%c0_8, %c0_9] : memref<16x1xf32, #tpu.memory_space<vmem>>, vector<16x1xf32>
    %10 = vector.broadcast %9 : vector<16x1xf32> to vector<16x128xf32>
    %11 = arith.addf %8, %10 : vector<16x128xf32>
    %12 = math.tanh %11 : vector<16x128xf32>
    %c0_10 = arith.constant 0 : index
    %c0_11 = arith.constant 0 : index
    %13 = vector.load %arg6[%c0_10, %c0_11] : memref<8x16xf32, #tpu.memory_space<vmem>>, vector<8x16xf32>
    %cst_12 = arith.constant dense<0.000000e+00> : vector<8x128xf32>
    %14 = tpu.matmul %13, %12, %cst_12 {dimension_numbers = #tpu.dot_dimension_numbers<[1], [0], [0], [1], [0, 0, 1, 1], [], []>} : vector<8x16xf32>, vector<16x128xf32>, vector<8x128xf32> -> vector<8x128xf32>
    %c0_13 = arith.constant 0 : index
    %c0_14 = arith.constant 0 : index
    %15 = vector.load %arg7[%c0_13, %c0_14] : memref<8x1xf32, #tpu.memory_space<vmem>>, vector<8x1xf32>
    %16 = vector.broadcast %15 : vector<8x1xf32> to vector<8x128xf32>
    %17 = arith.addf %14, %16 : vector<8x128xf32>
    %18 = math.tanh %17 : vector<8x128xf32>
    %c0_15 = arith.constant 0 : index
    %c0_16 = arith.constant 0 : index
    %19 = vector.load %arg8[%c0_15, %c0_16] : memref<1x8xf32, #tpu.memory_space<vmem>>, vector<1x8xf32>
    %cst_17 = arith.constant dense<0.000000e+00> : vector<1x128xf32>
    %20 = tpu.matmul %19, %18, %cst_17 {dimension_numbers = #tpu.dot_dimension_numbers<[1], [0], [0], [1], [0, 0, 1, 1], [], []>} : vector<1x8xf32>, vector<8x128xf32>, vector<1x128xf32> -> vector<1x128xf32>
    %c0_18 = arith.constant 0 : index
    %c0_19 = arith.constant 0 : index
    %21 = vector.load %arg9[%c0_18, %c0_19] : memref<1x1xf32, #tpu.memory_space<vmem>>, vector<1x1xf32>
    %22 = vector.broadcast %21 : vector<1x1xf32> to vector<1x128xf32>
    %23 = arith.addf %20, %22 : vector<1x128xf32>
    %24 = math.tanh %23 : vector<1x128xf32>
    %cst_20 = arith.constant 5.000000e-01 : f32
    %25 = vector.broadcast %cst_20 : f32 to vector<1x128xf32>
    %26 = arith.mulf %25, %24 : vector<1x128xf32>
    %cst_21 = arith.constant 5.000000e-01 : f32
    %27 = vector.broadcast %cst_21 : f32 to vector<1x128xf32>
    %28 = arith.addf %26, %27 : vector<1x128xf32>
    %c0_22 = arith.constant 0 : index
    %c0_23 = arith.constant 0 : index
    %29 = vector.load %arg10[%c0_22, %c0_23] : memref<1x128xf32, #tpu.memory_space<vmem>>, vector<1x128xf32>
    tpu.vector_store %arg10[%c0_22, %c0_23], %28 {strides = array<i32>} : memref<1x128xf32, #tpu.memory_space<vmem>>, vector<1x128xf32>,
    return
  }
  func.func @transform_0(%arg0: i32) -> (i32, i32) {
    %c0_i32 = arith.constant 0 : i32
    %c0_i32_0 = arith.constant 0 : i32
    return %arg0, %c0_i32 : i32, i32
  }
  func.func @transform_1(%arg0: i32) -> (i32, i32) {
    %c0_i32 = arith.constant 0 : i32
    %c0_i32_0 = arith.constant 0 : i32
    %c0_i32_1 = arith.constant 0 : i32
    return %c0_i32, %c0_i32_0 : i32, i32
  }
  func.func @transform_2(%arg0: i32) -> (i32, i32) {
    %c0_i32 = arith.constant 0 : i32
    %c0_i32_0 = arith.constant 0 : i32
    %c0_i32_1 = arith.constant 0 : i32
    return %c0_i32, %c0_i32_0 : i32, i32
  }
  func.func @transform_3(%arg0: i32) -> (i32, i32) {
    %c0_i32 = arith.constant 0 : i32
    %c0_i32_0 = arith.constant 0 : i32
    %c0_i32_1 = arith.constant 0 : i32
    return %c0_i32, %c0_i32_0 : i32, i32
  }
  func.func @transform_4(%arg0: i32) -> (i32, i32) {
    %c0_i32 = arith.constant 0 : i32
    %c0_i32_0 = arith.constant 0 : i32
    %c0_i32_1 = arith.constant 0 : i32
    return %c0_i32, %c0_i32_0 : i32, i32
  }
  func.func @transform_5(%arg0: i32) -> (i32, i32) {
    %c0_i32 = arith.constant 0 : i32
    %c0_i32_0 = arith.constant 0 : i32
    %c0_i32_1 = arith.constant 0 : i32
    return %c0_i32, %c0_i32_0 : i32, i32
  }
  func.func @transform_6(%arg0: i32) -> (i32, i32) {
    %c0_i32 = arith.constant 0 : i32
    %c0_i32_0 = arith.constant 0 : i32
    %c0_i32_1 = arith.constant 0 : i32
    return %c0_i32, %c0_i32_0 : i32, i32
  }
  func.func @transform_7(%arg0: i32) -> (i32, i32) {
    %c0_i32 = arith.constant 0 : i32
    %c0_i32_0 = arith.constant 0 : i32
    %c0_i32_1 = arith.constant 0 : i32
    return %c0_i32, %c0_i32_0 : i32, i32
  }
  func.func @transform_8(%arg0: i32) -> (i32, i32) {
    %c0_i32 = arith.constant 0 : i32
    %c0_i32_0 = arith.constant 0 : i32
    %c0_i32_1 = arith.constant 0 : i32
    return %c0_i32, %c0_i32_0 : i32, i32
  }
  func.func @transform_9(%arg0: i32) -> (i32, i32) {
    %c0_i32 = arith.constant 0 : i32
    %c0_i32_0 = arith.constant 0 : i32
    return %c0_i32, %arg0 : i32, i32
  }
}

</mosaic_0001>

<bundles_post_ra>
// kernel: tpu_custom_call.1
= control target key start
LH: loop header
LB: loop body
LE: loop exit
PB: predicated region body
PF: predicated region fallthrough
CT: control target
= control target key end

     0   :  { %s1320_s0 = inlined_call_operand.vmem [shape: f32[512,8], index: 0, kind: input, shape index: {}]   ;;  %s1321_s1 = inlined_call_operand.vmem [shape: f32[8,8], index: 1, kind: input, shape index: {}]   ;;  %s1322_s2 = inlined_call_operand.vmem [shape: f32[8,1], index: 2, kind: input, shape index: {}]   ;;  %s1323_s3 = inlined_call_operand.vmem [shape: f32[16,8], index: 3, kind: input, shape index: {}]   ;;  %s1324_s4 = inlined_call_operand.vmem [shape: f32[16,1], index: 4, kind: input, shape index: {}]   ;;  %s1325_s5 = inlined_call_operand.vmem [shape: f32[8,16], index: 5, kind: input, shape index: {}]   ;;  %s1326_s6 = inlined_call_operand.vmem [shape: f32[8,1], index: 6, kind: input, shape index: {}]   ;;  %s1327_s7 = inlined_call_operand.vmem [shape: f32[1,8], index: 7, kind: input, shape index: {}]   ;;  %s1328_s8 = inlined_call_operand.<no memory space> [shape: f32[1,1], index: 8, kind: input, shape index: {}]   ;;  %s1329_s9 = inlined_call_operand.hbm [shape: f32[1,512], index: 9, kind: output, shape index: {}]  }
   0x1   :  { %v14_v0 = vstv %s1328_s8 }
   0x2   :  { %15 = vst [vmem:[#allocation2] sm:$0x1] %v14_v0 }
   0x3   :  { %16 = vsyncpa [#allocation4], 0 }
   0x4   :  { %18 = vsyncpa [#allocation4 + $0x1], 0  ;;  %s1134_s11 = smov 0   ;;  %s1136_s12 = smov 0  }
   0x5   :  { %s1138_s13 = smov 0   ;;  %s1140_s14 = smov 0  }
   0x6 LB: > { %s814_s8 = sadd.s32 4294967295, %s1074_s14   ;;  %s815_s15 = sadd.s32 4294967294, %s1074_s14   ;;  %s1074_s14 = sphi %s1140_s14, %s1337_s14   ;;  %s1070_s13 = sphi %s1138_s13, %s1336_s13   ;;  %s1066_s12 = sphi %s1136_s12, %s1335_s12   ;;  %s1062_s11 = sphi %s1134_s11, %s1334_s11  }
   0x7   : > { %s1157_s16 = sadd.s32 1, %s1074_s14   ;;  %s225_s17 = sadd.s32 1, %s1070_s13 }
   0x8   : > { %s222_s18 = ssub.s32 %s1074_s14, %s1157_s16  ;;  %p235_p0 = scmp.ne.s32.totalorder %s1070_s13, %s1066_s12 }
   0x9   : > { %p223_p1 = scmp.eq.s32.totalorder %s222_s18, 0  ;;  %p236_p2 = scmp.eq.s32.totalorder %s814_s8, 3 }
   0xa   : > { %p241_p3 = scmp.ne.s32.totalorder %s1066_s12, %s1062_s11  ;;  %p242_p4 = scmp.eq.s32.totalorder %s815_s15, 3 }
   0xb   : > { %s1167_s19 = scalar_select %p223_p1, %s1070_s13, %s225_s17  }
   0xc   : > { %p1169_p5 = por %p236_p2, %p235_p0  ;;  %p1173_p6 = por %p242_p4, %p241_p3 }
   0xd   : > { %p818_p7 = scmp.ge.s32.totalorder %s1074_s14, 1  ;;  %p293_p8 = scmp.lt.s32.totalorder %s1074_s14, 5 }
   0xf   : > { %p294_p9 = pnand %p818_p7, %p293_p8 }
  0x10   : > { %s1179_s22 = sshll.u32 (!%p294_p9), %s814_s8, 4  ;;  %v1076_v1 = vmov (!%p294_p9), 0.0|0.0   ;;  %vm1077_vm0 = vmmov (!%p294_p9), 0   ;;  %v1078_v2 = vmov (!%p294_p9), 0.0   ;;  %v351_v3 = vld [vmem:[%s1322_s2] sm:$0xff] (!%p294_p9)  ;;  %v1079_v4 = vmov (!%p294_p9), 0  }
  0x11   : > { %297 = sbr.rel (%p294_p9) target bundleno = 1021 (0x3fd), region = 56  ;;  %922 = vmatprep.subr.bf16.mxu0 (!%p294_p9), %v1076_v1  ;;  %p329_p10 = scmp.lt.s32.totalorder (!%p294_p9), %s1179_s22, 63  ;;  %902 = vmatprep.mubr.msk.f32.mxu0 (!%p294_p9), %vm1077_vm0, %v1078_v2  ;;  %vm357_vm1 = vcmask (!%p294_p9), 64512   ;;  %v482_v5 = vld [vmem:[%s1324_s4] sm:$0xff] (!%p294_p9)  ;;  %v483_v34 = vld [vmem:[%s1324_s4 + $0x8] sm:$0xff] (!%p294_p9)  ;;  %vm584_vm3 = vcmask (!%p294_p9), 130048   ;;  %v666_v58 = vlaneseq (!%p294_p9) }
  0x12   : > { %1000 = vset.pattern.permute.xlu0 (!%p294_p9), %v1079_v4  ;;  %1001 = vset.pattern.permute.xlu1 (!%p294_p9), %v1079_v4  ;;  %vm1201_vm2 = vmpackc.low (!%p294_p9), %vm357_vm1, %vm357_vm1  ;;  %v660_v10 = vld [vmem:[#allocation2] sm:$0x1] (!%p294_p9)  ;;  %v481_v41 = vld [vmem:[%s1323_s3 + $0x8] sm:$0xff] (!%p294_p9)  ;;  %s326_s15 = sand.u32 (!%p294_p9), 1, %s1066_s12  }
  0x13   : > { %354 = vperm.xlu0 (!%p294_p9), %1000, %v351_v3   ;;  %v334_v32 = vld [vmem:[%s1321_s1] sm:$0xff] (!%p294_p9)  ;;  %491 = vperm.xlu1 (!%p294_p9), %1001, %v483_v34   ;;  %v667_v59 = vshrl.u32 (!%p294_p9), %v666_v58, 7  ;;  %s327_s17 = scalar_lea.vmem (!%p294_p9), [#allocation3], %s326_s15  ;;  %s748_s26 = scalar_lea.sflag (!%p294_p9), [#allocation4], %s326_s15 }
  0x14   : > { %v480_v33 = vld [vmem:[%s1323_s3] sm:$0xff] (!%p294_p9)  ;;  %s760_s18 = sshll.u32 (!%p294_p9), %s327_s17, 4  ;;  %s1280_s18 = int_to_ptr.vmem [resolvable:$true] %s760_s18 }
  0x15   : > { %907 = vmatprep.mubr.msk.f32.mxu1 (!%p294_p9), %vm357_vm1, %v480_v33  ;;  %v578_v35 = vld [vmem:[%s1326_s6] sm:$0xff] (!%p294_p9)  ;;  %v668_v60 = vsub.s32 (!%p294_p9), 0, %v667_v59  ;;  %s1012_s27 = scalar_lea.vmem (!%p294_p9), %s1280_s18, 16 }
  0x16   : > { %v577_v51 = vld [vmem:[%s1325_s5] sm:$0xff] (!%p294_p9)  ;;  %p1013_p11 = scmp.ne.s32.totalorder (!%p294_p9), %s1280_s18, %s1012_s27 }
  0x17   : > { %486 = vperm.xlu0 (!%p294_p9), %1000, %v482_v5   ;;  %581 = vperm.xlu1 (!%p294_p9), %1001, %v578_v35   ;;  %v659_v56 = vld [vmem:[%s1327_s7] sm:$0x1] (!%p294_p9) }
  0x18   : > { %s330_s25 = scalar_select %p329_p10, %s1179_s22, 63 }
  0x19   : > { %p1014_p12 = pnand %p1013_p11, %p1169_p5 }
  0x1a   : > { %s820_s28 = sshll.u32 %s330_s25, 3  ;;  %s1278_s25 = scalar_lea.hbm %s1329_s9, %s1179_s22 }
  0x1b   : > { %s1195_s10 = scalar_lea.vmem %s1320_s0, %s820_s28  ;;  %663 = vperm.xlu0 %1000, %v660_v10   ;;  %p1015_p13 = pneg %p1014_p12 }
  0x1c   : > { %v335_v6 = vld [vmem:[%s1195_s10] sm:$0xff]  ;;  %v336_v7 = vld [vmem:[%s1195_s10 + $0x8] sm:$0xff]  ;;  %v337_v11 = vld [vmem:[%s1195_s10 + $0x10] sm:$0xff]  ;;  %s1080_s28 = smov [#allocation3]  }
  0x1d   : > { %v923_v9 = vpack.c.bf16 %v336_v7, %v335_v6  ;;  %v338_v12 = vld [vmem:[%s1195_s10 + $0x18] sm:$0xff]  ;;  %v339_v14 = vld [vmem:[%s1195_s10 + $0x20] sm:$0xff]  ;;  %v340_v15 = vld [vmem:[%s1195_s10 + $0x28] sm:$0xff]  ;;  %s1016_s29 = sshll.u32 %s1080_s28, 4  ;;  %s1017_s29 = int_to_ptr.vmem [resolvable:$false] %s1016_s29 }
  0x1e   : > { %v927_v13 = vpack.c.bf16 %v338_v12, %v337_v11  ;;  %v931_v16 = vpack.c.bf16 %v340_v15, %v339_v14  ;;  %v341_v17 = vld [vmem:[%s1195_s10 + $0x30] sm:$0xff]  ;;  %v342_v18 = vld [vmem:[%s1195_s10 + $0x38] sm:$0xff]  ;;  %v343_v20 = vld [vmem:[%s1195_s10 + $0x40] sm:$0xff]  ;;  %s1018_s30 = scalar_lea.vmem %s1017_s29, 32  ;;  %p1019_p0 = scmp.lt.s32.totalorder %s1280_s18, %s1017_s29 }
  0x1f   : > { %925 = vmatpush3.bf16.xpose.msk.msra.mxu0 %vm1201_vm2, %v923_v9  ;;  %v935_v19 = vpack.c.bf16 %v342_v18, %v341_v17  ;;  %v344_v21 = vld [vmem:[%s1195_s10 + $0x48] sm:$0xff]  ;;  %v345_v23 = vld [vmem:[%s1195_s10 + $0x50] sm:$0xff]  ;;  %v346_v24 = vld [vmem:[%s1195_s10 + $0x58] sm:$0xff]  ;;  %p1020_p1 = scmp.lt.s32.totalorder %s1018_s30, %s1012_s27 }
  0x20   : > { %926 = vmatprep.subr.bf16.mxu0 %v1076_v1  ;;  %v939_v22 = vpack.c.bf16 %v344_v21, %v343_v20  ;;  %v943_v25 = vpack.c.bf16 %v346_v24, %v345_v23  ;;  %v347_v26 = vld [vmem:[%s1195_s10 + $0x60] sm:$0xff]  ;;  %v348_v27 = vld [vmem:[%s1195_s10 + $0x68] sm:$0xff]  ;;  %v349_v29 = vld [vmem:[%s1195_s10 + $0x70] sm:$0xff] }
  0x21   : > { %v947_v28 = vpack.c.bf16 %v348_v27, %v347_v26  ;;  %v350_v30 = vld [vmem:[%s1195_s10 + $0x78] sm:$0xff]  ;;  %p1021_p2 = por %p1020_p1, %p1019_p0 }
  0x22   : > { %v951_v31 = vpack.c.bf16 %v350_v30, %v349_v29 }
  0x23   : > { %p1022_p3 = pnand %p1021_p2, %p1015_p13 }
  0x27   : > { %929 = vmatpush3.bf16.xpose.msk.msra.mxu0 %vm1201_vm2, %v927_v13 }
  0x28   : > { %930 = vmatprep.subr.bf16.mxu0 %v1076_v1 }
  0x2f   : > { %933 = vmatpush3.bf16.xpose.msk.msra.mxu0 %vm1201_vm2, %v931_v16 }
  0x30   : > { %934 = vmatprep.subr.bf16.mxu0 %v1076_v1 }
  0x37   : > { %937 = vmatpush3.bf16.xpose.msk.msra.mxu0 %vm1201_vm2, %v935_v19 }
  0x38   : > { %938 = vmatprep.subr.bf16.mxu0 %v1076_v1 }
  0x3f   : > { %941 = vmatpush3.bf16.xpose.msk.msra.mxu0 %vm1201_vm2, %v939_v22 }
  0x40   : > { %942 = vmatprep.subr.bf16.mxu0 %v1076_v1 }
  0x47   : > { %945 = vmatpush3.bf16.xpose.msk.msra.mxu0 %vm1201_vm2, %v943_v25 }
  0x48   : > { %946 = vmatprep.subr.bf16.mxu0 %v1076_v1 }
  0x4f   : > { %949 = vmatpush3.bf16.xpose.msk.msra.mxu0 %vm1201_vm2, %v947_v28 }
  0x50   : > { %950 = vmatprep.subr.bf16.mxu0 %v1076_v1 }
  0x57   : > { %953 = vmatpush3.bf16.xpose.msk.msra.mxu0 %vm1201_vm2, %v951_v31 }
  0x5e   : > { %903 = vmatmul.mubr.msk.f32.vlgmr.msra.gmra.mrb[0].mxu0 %vm357_vm1, %v334_v32 }
  0x92   : > { %v355_v36 = vpop.permute.xlu0 %354  ;;  %v492_v42 = vpop.permute.xlu1 %491 }
  0x96   : > { %v487_v44 = vpop.permute.xlu0 %486  ;;  %v582_v52 = vpop.permute.xlu1 %581 }
  0x9a   : > { %v664_v61 = vpop.permute.xlu0 %663 }
  0x9b   : > { %v669_v62 = vrot.slane %v664_v61, %v668_v60 }
 0x131   : > { %v475_v37 = vpop.f32.mrb[0].mxu0 }
 0x132   : > { %v476_v38 = vadd.f32 %v475_v37, %v355_v36  ;;  %v904_v39 = vpop.f32.mrb[1].mxu0 }
 0x134   : > { %1002 = vtanh.f32 %v476_v38 }
 0x13e   : > { %v1003_v40 = vpop.eup %1002 }
 0x13f   : > { %905 = vmatprep.subr.mxu1 %v1003_v40 }
 0x140   : > { %906 = vmatpush3.msra.mxu1 %v1003_v40 }
 0x141   : > { %908 = vmatmul.mubr.msk.f32.vlgmr.msra.gmra.mrb[0].mxu1 %vm357_vm1, %v481_v41  ;;  %954 = vmatprep.subr.bf16.mxu1 %v1076_v1 }
 0x142   : > { %914 = vmatprep.mubr.msk.f32.mxu1 %vm1077_vm0, %v1078_v2 }
 0x214   : > { %v909_v43 = vpop.f32.mrb[0].mxu1 }
 0x215   : > { %v572_v45 = vadd.f32 %v909_v43, %v492_v42  ;;  %v566_v46 = vpop.f32.mrb[1].mxu1 }
 0x216   : > { %v567_v47 = vadd.f32 %v566_v46, %v487_v44 }
 0x217   : > { %1004 = vtanh.f32 %v572_v45 }
 0x218   : > { %1006 = vtanh.f32 %v567_v47 }
 0x221   : > { %v1005_v48 = vpop.eup %1004 }
 0x222   : > { %v1007_v49 = vpop.eup %1006 }
 0x223   : > { %v955_v50 = vpack.c.bf16 %v1005_v48, %v1007_v49 }
 0x225   : > { %956 = vmatpush3.bf16.msra.mxu1 %v955_v50 }
 0x226   : > { %917 = vmatprep.subr.mxu1 %v1078_v2 }
 0x228   : > { %915 = vmatmul.mubr.msk.f32.vlgmr.msra.gmra.mrb[2].mxu1 %vm584_vm3, %v577_v51 }
 0x229   : > { %919 = vmatprep.mubr.msk.f32.mxu1 %vm1077_vm0, %v1078_v2 }
 0x2fb   : > { %v654_v53 = vpop.f32.mrb[2].mxu1 }
 0x2fc   : > { %v655_v54 = vadd.f32 %v654_v53, %v582_v52  ;;  %v916_v55 = vpop.f32.mrb[3].mxu1 }
 0x2fe   : > { %1008 = vtanh.f32 %v655_v54 }
 0x308   : > { %v1009_v57 = vpop.eup %1008 }
 0x309   : > { %918 = vmatpush3.msra.mxu1 %v1009_v57 }
 0x30a   : > { %920 = vmatmul.mubr.msk.f32.vlgmr.msra.gmra.mrb[4].mxu1 %vm357_vm1, %v659_v56 }
 0x3dd   : > { %v739_v63 = vpop.f32.mrb[4].mxu1 }
 0x3de   : > { %v740_v0 = vadd.f32 %v739_v63, %v669_v62  ;;  %v921_v1 = vpop.f32.mrb[5].mxu1 }
 0x3e0   : > { %1010 = vtanh.f32 %v740_v0 }
 0x3ea   : > { %v1011_v2 = vpop.eup %1010 }
 0x3eb   : > { %v744_v3 = vmul.f32 0.5, %v1011_v2 }
 0x3ed   : > { %v745_v4 = vadd.f32 0.5, %v744_v3 }
 0x3ef   : > { %746 = vst [vmem:[%s327_s17] sm:$0x1] %v745_v4 }
 0x3f0   : > { %1025 = shalt.err (!%p1022_p3)
}
 0x3f1   : > { %s1026_s22 = scalar_lea.hbm %s1278_s25, 16  ;;  %s1030_s15 = scalar_lea.hbm %s1329_s9, 64 }
 0x3f2   : > { %p1027_p4 = scmp.ne.s32.totalorder %s1278_s25, %s1026_s22  ;;  %p1031_p9 = scmp.lt.u32.totalorder %s1278_s25, %s1329_s9 }
 0x3f3   : > { %p1032_p10 = scmp.lt.u32.totalorder %s1030_s15, %s1026_s22  ;;  %p1034_p12 = scmp.lt.u32.totalorder %s1026_s22, %s1278_s25 }
 0x3f4   : > { %p1028_p7 = pnand %p1027_p4, %p1169_p5 }
 0x3f5   : > { %p1033_p11 = por %p1032_p10, %p1031_p9 }
 0x3f6   : > { %p1029_p8 = pneg %p1028_p7 }
 0x3f7   : > { %p1035_p13 = por %p1034_p12, %p1033_p11 }
 0x3f9   : > { %p1036_p0 = pnand %p1035_p13, %p1029_p8 }
 0x3fb   : > { %1039 = shalt.err (!%p1036_p0)
}
 0x3fc   : > { %957 = dma.vmem_to_hbm [thread:$0]  (%p1169_p5), %s1280_s18, 16, %s1278_s25, %s748_s26  }
 0x3fd PF: > { %p963_p1 = scmp.ge.s32.totalorder %s1074_s14, 2  ;;  %s772_s24 = sand.u32 1, %s1062_s11  }
 0x3fe   : > { %s773_s27 = scalar_lea.sflag [#allocation4], %s772_s24 }
 0x3ff   : > { %p960_p2 = pnand %p963_p1, %p1173_p6 }
 0x401   : > { %1057 = dma.done.wait (!%p960_p2), %s773_s27, 16  }
 0x402   : > { %1059 = vsyncadd (!%p960_p2), %s773_s27, 4294967280  ;;  %p21_p3 = scmp.ge.s32.totalorder %s1157_s16, 6   ;;  %s1334_s11 = smov %s1066_s12 }
 0x403   : > { %s1335_s12 = smov %s1070_s13  ;;  %s1336_s13 = smov %s1167_s19 }
 0x404   : > { %s1337_s14 = smov %s1157_s16  ;;  %23 = sbr.rel (!%p21_p3) target bundleno = 6 (0x6), region = 91 }
 0x40b   :  { %777 = vsyncpa [#allocation4], 1 }
 0x40c   :  { %779 = vsyncpa [#allocation4 + $0x1], 1 }

</bundles_post_ra>
